<compile_context>
chip_gen: v5e
topology: v5e:2x2
jax: 0.10.0
libtpu: 0.0.40
codegen_flags: <defaults>
</compile_context>

<pallas_src>
import functools

import jax
import jax.numpy as jnp
from jax.experimental import pallas as pl
from jax.experimental.pallas import tpu as pltpu

_LANE = 128
_SUBLANE = 8
_MAX_TP = 8192  # hard cap on pixels per tile (multiple of 128)


def _round_up(x, m):
    return (x + m - 1) // m * m


def _vmem_plan():
    """(data_budget_bytes, vmem_limit_bytes) chosen per TPU generation.

    v7x has only 64 MiB physical VMEM (32 MiB scoped default) and 2 TCs, so
    keep the per-step working set smaller there; v5e/v6e have 128 MiB physical
    VMEM so a 48 MiB scoped limit leaves lots of headroom for bigger tiles
    (v5e's scoped default is only 16 MiB, hence the explicit limit).
    """
    try:
        kind = jax.devices()[0].device_kind.lower()
    except Exception:  # defensive: no devices visible at trace time
        kind = ""
    if "7" in kind:  # v7x family
        return 20 << 20, 36 << 20
    return 26 << 20, 48 << 20


def _per_pixel_bytes(c, o_pad, n_out):
    # f32 bytes per pixel column resident in VMEM during one tiled grid step:
    #   2*C  double-buffered x tile, + C ReLU temp,
    #   O_pad matmul-result temp, + 2*n_out double-buffered outputs.
    return 4 * (3 * c + o_pad + 2 * n_out)


def _choose_tp(hw, c, o_pad, n_out, data_budget):
    """Pick a lane-dense pixel tile that fits the VMEM budget, balanced over HW."""
    max_tp = (data_budget // _per_pixel_bytes(c, o_pad, n_out)) // _LANE * _LANE
    max_tp = int(max(_LANE, min(max_tp, _MAX_TP)))
    if hw <= max_tp:
        return hw  # single full-width tile per batch element (block == full dim)
    # Balance tiles so a ragged last tile is not a near-empty grid step.
    n_tiles = pl.cdiv(hw, max_tp)
    return int(min(_round_up(pl.cdiv(hw, n_tiles), _LANE), max_tp))


def _rpn_tile_kernel(x_ref, w_ref, b_ref, logits_ref, bbox_ref, *,
                     num_anchors, bbox_row0):
    """One (batch, pixel-tile) grid step.

    x_ref: (C, TP) channel-major pixels; w_ref: (O_pad, C); b_ref: (O_pad, 1).
    Per-pixel math ONLY: with ragged last tiles, out-of-bounds input lanes feed
    only out-of-bounds output lanes (never written back).  Adding any
    cross-pixel op (pooling / HW softmax) here would silently break that.
    """
    t = jnp.maximum(x_ref[...], 0.0)                                  # VPU ReLU
    # Keep this orientation: (O_pad, C) x (C, TP) -> TP-last lane-dense output.
    out = jnp.dot(w_ref[...], t,
                  preferred_element_type=jnp.float32) + b_ref[...]   # (O_pad, TP)
    logits_ref[...] = out[:num_anchors, :]                            # rows 0..A-1
    bbox_ref[...] = out[bbox_row0:bbox_row0 + 4 * num_anchors, :]     # 8-aligned


def _rpn_level_kernel(x_ref, w_ref, b_ref, logits_ref, bbox_ref, *,
                      num_anchors, bbox_row0):
    """Whole (small) pyramid level in one invocation: x_ref is (N, C, HW)."""
    w = w_ref[...]
    b = b_ref[...]
    for n in range(x_ref.shape[0]):  # small N, unrolled at trace time
        t = jnp.maximum(x_ref[n], 0.0)                                # (C, HW)
        out = jnp.dot(w, t, preferred_element_type=jnp.float32) + b   # (O_pad, HW)
        logits_ref[n] = out[:num_anchors, :]
        bbox_ref[n] = out[bbox_row0:bbox_row0 + 4 * num_anchors, :]


def _rpn_head_level(feat_nchw, w_fused, b_fused, num_anchors, cls_pad,
                    data_budget, vmem_limit):
    """feat (N,C,H,W) f32 -> (logits (N,A,H,W), bbox (N,4A,H,W)), all NCHW."""
    N, C, H, W = feat_nchw.shape
    HW = H * W
    A = num_anchors
    O_pad = w_fused.shape[0]
    n_out = 5 * A

    x = feat_nchw.reshape(N, C, HW)       # free: NCHW is already channel-major
    b2d = b_fused.reshape(O_pad, 1)

    cost = pl.CostEstimate(
        flops=2 * O_pad * C * HW * N,
        transcendentals=0,
        bytes_accessed=4 * (N * C * HW + N * n_out * HW + O_pad * (C + 1)))

    out_shape = (jax.ShapeDtypeStruct((N, A, HW), jnp.float32),
                 jax.ShapeDtypeStruct((N, 4 * A, HW), jnp.float32))

    kernel_kwargs = dict(num_anchors=A, bbox_row0=cls_pad)

    # Whole-level VMEM bytes if done in a single invocation (conservatively
    # counting double-buffered I/O plus the ReLU / matmul-result temps).
    single_step_bytes = (4 * HW * N * (3 * C + O_pad + 2 * n_out)
                         + 8 * O_pad * (C + 1))

    if single_step_bytes <= data_budget:
        # Tiny level: one invocation, no grid -> no per-step pipeline overhead.
        logits, bbox = pl.pallas_call(
            functools.partial(_rpn_level_kernel, **kernel_kwargs),
            out_shape=out_shape,
            cost_estimate=cost,
            compiler_params=pltpu.CompilerParams(
                vmem_limit_bytes=int(vmem_limit)),
        )(x, w_fused, b2d)
    else:
        tp = _choose_tp(HW, C, O_pad, n_out, data_budget)
        grid = (N, pl.cdiv(HW, tp))
        logits, bbox = pl.pallas_call(
            functools.partial(_rpn_tile_kernel, **kernel_kwargs),
            out_shape=out_shape,
            grid_spec=pltpu.PrefetchScalarGridSpec(
                num_scalar_prefetch=0,
                grid=grid,
                in_specs=[
                    # x tile: batch dim squeezed -> kernel sees (C, tp)
                    pl.BlockSpec((None, C, tp), lambda n, p: (n, 0, p)),
                    # fused weight / bias: constant index -> stays resident
                    pl.BlockSpec((O_pad, C), lambda n, p: (0, 0)),
                    pl.BlockSpec((O_pad, 1), lambda n, p: (0, 0)),
                ],
                out_specs=[
                    pl.BlockSpec((None, A, tp), lambda n, p: (n, 0, p)),
                    pl.BlockSpec((None, 4 * A, tp), lambda n, p: (n, 0, p)),
                ],
            ),
            cost_estimate=cost,
            compiler_params=pltpu.CompilerParams(
                # Both axes independent -> megacore-shardable on v7x (2 TCs);
                # no effect (and no harm) on single-TC v5e/v6e.
                dimension_semantics=("parallel", "parallel"),
                vmem_limit_bytes=int(vmem_limit)),
        )(x, w_fused, b2d)

    # Free reshapes back to NCHW — no transposes, no slicing of padded rows.
    return logits.reshape(N, A, H, W), bbox.reshape(N, 4 * A, H, W)


def _fuse_params(params):
    """Fuse + sublane-align the two 1x1 heads.

    Rows [0, A) = cls, rows [A, cls_pad) = zero padding, rows
    [cls_pad, cls_pad + 4A) = bbox, with cls_pad = round_up(A, 8) so both
    output slices of the fused matmul start on an 8-row boundary.
    """
    A, C = params["w_cls"].shape
    cls_pad = _round_up(A, _SUBLANE)
    o_pad = cls_pad + 4 * A
    w = jnp.zeros((o_pad, C), jnp.float32)
    w = w.at[:A].set(params["w_cls"]).at[cls_pad:].set(params["w_bbox"])
    b = jnp.zeros((o_pad,), jnp.float32)
    b = b.at[:A].set(params["b_cls"]).at[cls_pad:].set(params["b_bbox"])
    return w, b, A, cls_pad


def rpn_head_forward(features, params):
    """features: list of NCHW arrays -> (list of logits NCHW, list of bbox NCHW)."""
    w_fused, b_fused, num_anchors, cls_pad = _fuse_params(params)
    data_budget, vmem_limit = _vmem_plan()

    # TODO(synk): if the surrounding model tolerates bf16 activations, taking
    # features/outputs in bf16 (matmul still accumulating in f32) would halve
    # HBM traffic and wall time on this bandwidth-bound head.
    logits, bbox_reg = [], []
    for feat in features:
        l, b = _rpn_head_level(feat.astype(jnp.float32), w_fused, b_fused,
                               num_anchors, cls_pad, data_budget, vmem_limit)
        logits.append(l)
        bbox_reg.append(b)
    return logits, bbox_reg


def init_params(key, in_channels, num_anchors):
    k1, k2, k3 = jax.random.split(key, 3)
    # self.conv (3x3) is initialized for parity with the PyTorch module, but —
    # exactly like the reference — it is never used in forward().
    w_conv = 0.01 * jax.random.normal(
        k1, (in_channels, in_channels, 3, 3), jnp.float32)
    w_cls = 0.01 * jax.random.normal(
        k2, (num_anchors, in_channels, 1, 1), jnp.float32)
    w_bbox = 0.01 * jax.random.normal(
        k3, (num_anchors * 4, in_channels, 1, 1), jnp.float32)
    return {
        "w_conv": w_conv,
        "b_conv": jnp.zeros((in_channels,), jnp.float32),
        # 1x1 conv weight (O, C, 1, 1) -> (O, C); already the layout the
        # channel-major kernel wants (no transpose needed).
        "w_cls": w_cls[:, :, 0, 0],
        "b_cls": jnp.zeros((num_anchors,), jnp.float32),
        "w_bbox": w_bbox[:, :, 0, 0],
        "b_bbox": jnp.zeros((num_anchors * 4,), jnp.float32),
    }


def _ref_forward(features, params):
    """Pure-JAX reference matching the PyTorch semantics."""
    logits, bbox_reg = [], []
    for feat in features:
        t = jnp.maximum(feat, 0.0)
        l = jnp.einsum("nchw,oc->nohw", t, params["w_cls"]) \
            + params["b_cls"][None, :, None, None]
        b = jnp.einsum("nchw,oc->nohw", t, params["w_bbox"]) \
            + params["b_bbox"][None, :, None, None]
        logits.append(l)
        bbox_reg.append(b)
    return logits, bbox_reg


if __name__ == "__main__":
    in_channels = 4
    num_anchors = 3

    key = jax.random.PRNGKey(0)
    kp, kf1, kf2, kf3 = jax.random.split(key, 4)
    params = init_params(kp, in_channels, num_anchors)

    # Two pyramid levels (list input, like torchvision FPN features).
    features = [
        jax.random.normal(kf1, (2, in_channels, 16, 16), jnp.float32),
        jax.random.normal(kf2, (2, in_channels, 8, 8), jnp.float32),
    ]

    logits, bbox_reg = rpn_head_forward(features, params)
    for arr in logits + bbox_reg:
        jax.block_until_ready(arr)

    ref_logits, ref_bbox = _ref_forward(features, params)
    for got, ref in zip(logits + bbox_reg, ref_logits + ref_bbox):
        assert got.shape == ref.shape, (got.shape, ref.shape)
        assert jnp.allclose(got, ref, atol=1e-4, rtol=1e-4)

    # Also exercise the tiled (large-level) path — including a ragged last
    # pixel tile — by shrinking the data budget so tiling kicks in at tp=128.
    w_fused, b_fused, A, cls_pad = _fuse_params(params)
    feat_ragged = jax.random.normal(kf3, (2, in_channels, 16, 18), jnp.float32)
    l_t, b_t = _rpn_head_level(feat_ragged, w_fused, b_fused, A, cls_pad,
                               data_budget=1, vmem_limit=32 << 20)
    jax.block_until_ready(l_t)
    jax.block_until_ready(b_t)
    rl, rb = _ref_forward([feat_ragged], params)
    assert l_t.shape == rl[0].shape and b_t.shape == rb[0].shape
    assert jnp.allclose(l_t, rl[0], atol=1e-4, rtol=1e-4)
    assert jnp.allclose(b_t, rb[0], atol=1e-4, rtol=1e-4)

    print("KERNEL_OK")
</pallas_src>

<mosaic_0001>
module attributes {stable_mosaic.version = 11 : i64} {
  func.func @_rpn_level_kernel(%arg0: memref<2x4x256xf32, #tpu.memory_space<vmem>>, %arg1: memref<20x4xf32, #tpu.memory_space<vmem>>, %arg2: memref<20x1xf32, #tpu.memory_space<vmem>>, %arg3: memref<2x3x256xf32, #tpu.memory_space<vmem>>, %arg4: memref<2x12x256xf32, #tpu.memory_space<vmem>>) attributes {dimension_semantics = [], scalar_prefetch = 0 : i64, scratch_operands = 0 : i64, tpu.core_type = #tpu.core_type<tc>} {
    %c0 = arith.constant 0 : index
    %c0_0 = arith.constant 0 : index
    %0 = vector.load %arg1[%c0, %c0_0] : memref<20x4xf32, #tpu.memory_space<vmem>>, vector<20x4xf32>
    %c0_1 = arith.constant 0 : index
    %c0_2 = arith.constant 0 : index
    %1 = vector.load %arg2[%c0_1, %c0_2] : memref<20x1xf32, #tpu.memory_space<vmem>>, vector<20x1xf32>
    %c0_3 = arith.constant 0 : index
    %c0_4 = arith.constant 0 : index
    %c0_5 = arith.constant 0 : index
    %2 = vector.load %arg0[%c0_3, %c0_4, %c0_5] : memref<2x4x256xf32, #tpu.memory_space<vmem>>, vector<1x4x256xf32>
    %3 = vector.shape_cast %2 : vector<1x4x256xf32> to vector<4x256xf32>
    %cst = arith.constant 0.000000e+00 : f32
    %4 = vector.broadcast %cst : f32 to vector<4x256xf32>
    %5 = arith.maximumf %3, %4 : vector<4x256xf32>
    %cst_6 = arith.constant dense<0.000000e+00> : vector<20x256xf32>
    %6 = tpu.matmul %0, %5, %cst_6 {dimension_numbers = #tpu.dot_dimension_numbers<[1], [0], [0], [1], [0, 0, 1, 1], [], []>} : vector<20x4xf32>, vector<4x256xf32>, vector<20x256xf32> -> vector<20x256xf32>
    %7 = vector.broadcast %1 : vector<20x1xf32> to vector<20x256xf32>
    %8 = arith.addf %6, %7 : vector<20x256xf32>
    %9 = vector.extract_strided_slice %8 {offsets = [0, 0], sizes = [3, 256], strides = [1, 1]} : vector<20x256xf32> to vector<3x256xf32>
    %c0_7 = arith.constant 0 : index
    %c0_8 = arith.constant 0 : index
    %c0_9 = arith.constant 0 : index
    %10 = vector.load %arg3[%c0_7, %c0_8, %c0_9] : memref<2x3x256xf32, #tpu.memory_space<vmem>>, vector<1x3x256xf32>
    %11 = vector.shape_cast %10 : vector<1x3x256xf32> to vector<3x256xf32>
    %12 = vector.shape_cast %9 : vector<3x256xf32> to vector<1x3x256xf32>
    tpu.vector_store %arg3[%c0_7, %c0_8, %c0_9], %12 {strides = array<i32>} : memref<2x3x256xf32, #tpu.memory_space<vmem>>, vector<1x3x256xf32>,
    %13 = vector.extract_strided_slice %8 {offsets = [8, 0], sizes = [12, 256], strides = [1, 1]} : vector<20x256xf32> to vector<12x256xf32>
    %c0_10 = arith.constant 0 : index
    %c0_11 = arith.constant 0 : index
    %c0_12 = arith.constant 0 : index
    %14 = vector.load %arg4[%c0_10, %c0_11, %c0_12] : memref<2x12x256xf32, #tpu.memory_space<vmem>>, vector<1x12x256xf32>
    %15 = vector.shape_cast %14 : vector<1x12x256xf32> to vector<12x256xf32>
    %16 = vector.shape_cast %13 : vector<12x256xf32> to vector<1x12x256xf32>
    tpu.vector_store %arg4[%c0_10, %c0_11, %c0_12], %16 {strides = array<i32>} : memref<2x12x256xf32, #tpu.memory_space<vmem>>, vector<1x12x256xf32>,
    %c1 = arith.constant 1 : index
    %c0_13 = arith.constant 0 : index
    %c0_14 = arith.constant 0 : index
    %17 = vector.load %arg0[%c1, %c0_13, %c0_14] : memref<2x4x256xf32, #tpu.memory_space<vmem>>, vector<1x4x256xf32>
    %18 = vector.shape_cast %17 : vector<1x4x256xf32> to vector<4x256xf32>
    %cst_15 = arith.constant 0.000000e+00 : f32
    %19 = vector.broadcast %cst_15 : f32 to vector<4x256xf32>
    %20 = arith.maximumf %18, %19 : vector<4x256xf32>
    %cst_16 = arith.constant dense<0.000000e+00> : vector<20x256xf32>
    %21 = tpu.matmul %0, %20, %cst_16 {dimension_numbers = #tpu.dot_dimension_numbers<[1], [0], [0], [1], [0, 0, 1, 1], [], []>} : vector<20x4xf32>, vector<4x256xf32>, vector<20x256xf32> -> vector<20x256xf32>
    %22 = vector.broadcast %1 : vector<20x1xf32> to vector<20x256xf32>
    %23 = arith.addf %21, %22 : vector<20x256xf32>
    %24 = vector.extract_strided_slice %23 {offsets = [0, 0], sizes = [3, 256], strides = [1, 1]} : vector<20x256xf32> to vector<3x256xf32>
    %c1_17 = arith.constant 1 : index
    %c0_18 = arith.constant 0 : index
    %c0_19 = arith.constant 0 : index
    %25 = vector.load %arg3[%c1_17, %c0_18, %c0_19] : memref<2x3x256xf32, #tpu.memory_space<vmem>>, vector<1x3x256xf32>
    %26 = vector.shape_cast %25 : vector<1x3x256xf32> to vector<3x256xf32>
    %27 = vector.shape_cast %24 : vector<3x256xf32> to vector<1x3x256xf32>
    tpu.vector_store %arg3[%c1_17, %c0_18, %c0_19], %27 {strides = array<i32>} : memref<2x3x256xf32, #tpu.memory_space<vmem>>, vector<1x3x256xf32>,
    %28 = vector.extract_strided_slice %23 {offsets = [8, 0], sizes = [12, 256], strides = [1, 1]} : vector<20x256xf32> to vector<12x256xf32>
    %c1_20 = arith.constant 1 : index
    %c0_21 = arith.constant 0 : index
    %c0_22 = arith.constant 0 : index
    %29 = vector.load %arg4[%c1_20, %c0_21, %c0_22] : memref<2x12x256xf32, #tpu.memory_space<vmem>>, vector<1x12x256xf32>
    %30 = vector.shape_cast %29 : vector<1x12x256xf32> to vector<12x256xf32>
    %31 = vector.shape_cast %28 : vector<12x256xf32> to vector<1x12x256xf32>
    tpu.vector_store %arg4[%c1_20, %c0_21, %c0_22], %31 {strides = array<i32>} : memref<2x12x256xf32, #tpu.memory_space<vmem>>, vector<1x12x256xf32>,
    return
  }
}

</mosaic_0001>

<bundles_post_ra>
// kernel: tpu_custom_call.1
= control target key start
LH: loop header
LB: loop body
LE: loop exit
PB: predicated region body
PF: predicated region fallthrough
CT: control target
= control target key end

     0   :  { %v228_v1 = vmov 0   ;;  %vm53_vm0 = vcmask 1043456   ;;  %vm43_vm1 = vcmask 31744   ;;  %s326_s0 = inlined_call_operand.vmem [shape: f32[2,4,256], index: 0, kind: input, shape index: {}]   ;;  %s327_s2 = inlined_call_operand.vmem [shape: f32[20,1], index: 2, kind: input, shape index: {}]   ;;  %s328_s1 = inlined_call_operand.vmem [shape: f32[20,4], index: 1, kind: input, shape index: {}]   ;;  %s329_s3 = inlined_call_operand.vmem [shape: f32[2,3,256], index: 3, kind: output, shape index: {0}]   ;;  %s330_s4 = inlined_call_operand.vmem [shape: f32[2,12,256], index: 4, kind: output, shape index: {1}]  }
   0x1   :  { %v22_v0 = vld [vmem:[%s326_s0] sm:$0xff]  ;;  %226 = vset.pattern.permute.xlu0 %v228_v1  ;;  %227 = vset.pattern.permute.xlu1 %v228_v1  ;;  %v211_v4 = vld [vmem:[%s326_s0 + $0x8] sm:$0xff]  ;;  %v21_v5 = vld [vmem:[%s327_s2 + $0x10] sm:$0xf] }
   0x2   :  { %v23_v2 = vmax.f32 %v22_v0, 0.0  ;;  %v19_v3 = vld [vmem:[%s327_s2] sm:$0xff]  ;;  %36 = vperm.xlu1 %227, %v21_v5   ;;  %v122_v6 = vmax.f32 %v211_v4, 0.0  ;;  %v20_v7 = vld [vmem:[%s327_s2 + $0x8] sm:$0xff]  ;;  %v18_v14 = vld [vmem:[%s328_s1 + $0x10] sm:$0xf] }
   0x3   :  { %26 = vperm.xlu0 %226, %v19_v3   ;;  %v16_v10 = vld [vmem:[%s328_s1] sm:$0xff]  ;;  %v17_v13 = vld [vmem:[%s328_s1 + $0x8] sm:$0xff] }
   0x4   :  { %40 = vst [vmem:[#allocation1] ss:$2 sm:$0xff] %v23_v2 }
   0xb   :  { %v41_v8 = vld.sshfl [vmem:[#allocation1] sm:$0xff pattern:$0x75316420]  ;;  %v42_v9 = vld.sshfl [vmem:[#allocation1 + $0x8] sm:$0xff pattern:$0x75316420]  ;;  %31 = vperm.xlu0 %226, %v20_v7  }
   0xc   :  { %124 = vst [vmem:[#allocation1] ss:$2 sm:$0xff] %v122_v6  ;;  %207 = vmatpush.msk.msra.mxu1 %vm53_vm0, %v42_v9  ;;  %203 = vmatpush.msk.msra.mxu0 %vm53_vm0, %v41_v8 }
   0xd   :  { %208 = vmatmul.msk.f32.vlgmr.msra.gmra.mxu1 %vm43_vm1, %v16_v10  ;;  %204 = vmatmul.msk.f32.vlgmr.msra.gmra.mxu0 %vm43_vm1, %v16_v10 }
  0x13   :  { %v125_v11 = vld.sshfl [vmem:[#allocation1] sm:$0xff pattern:$0x75316420]  ;;  %v126_v12 = vld.sshfl [vmem:[#allocation1 + $0x8] sm:$0xff pattern:$0x75316420] }
  0x14   :  { %212 = vmatpush.msk.msra.mxu2 %vm53_vm0, %v125_v11  ;;  %216 = vmatpush.msk.msra.mxu3 %vm53_vm0, %v126_v12 }
  0x15   :  { %213 = vmatmul.msk.f32.vlgmr.msra.gmra.mxu2 %vm43_vm1, %v16_v10  ;;  %217 = vmatmul.msk.f32.vlgmr.msra.gmra.mxu3 %vm43_vm1, %v16_v10 }
  0x16   :  { %205 = vmatmul.msk.f32.gmra.mxu0 %vm43_vm1, %v17_v13  ;;  %209 = vmatmul.msk.f32.gmra.mxu1 %vm43_vm1, %v17_v13 }
  0x1d   :  { %214 = vmatmul.msk.f32.gmra.mxu2 %vm43_vm1, %v17_v13  ;;  %218 = vmatmul.msk.f32.gmra.mxu3 %vm43_vm1, %v17_v13 }
  0x1e   :  { %206 = vmatmul.msk.f32.gmra.mxu0 %vm43_vm1, %v18_v14  ;;  %210 = vmatmul.msk.f32.gmra.mxu1 %vm43_vm1, %v18_v14 }
  0x25   :  { %215 = vmatmul.msk.f32.gmra.mxu2 %vm43_vm1, %v18_v14  ;;  %219 = vmatmul.msk.f32.gmra.mxu3 %vm43_vm1, %v18_v14 }
  0x74   :  { %v37_v30 = vpop.permute.xlu1 %36 }
  0x75   :  { %v27_v15 = vpop.permute.xlu0 %26 }
  0x7d   :  { %v32_v22 = vpop.permute.xlu0 %31 }
  0x8a   :  { %v101_v16 = vpop.f32.mrf.mxu1  ;;  %v75_v17 = vpop.f32.mrf.mxu0 }
  0x8b   :  { %v102_v18 = vadd.f32 %v101_v16, %v27_v15  ;;  %v76_v19 = vadd.f32 %v75_v17, %v27_v15 }
  0x8d   :  { %v112_v20 = vrot.slane %v102_v18, 4 }
  0x8f   :  { %v113_v21 = vsel %vm53_vm0, %v76_v19, %v112_v20 }
  0x90   :  { %115 = vst [vmem:[%s329_s3] sm:$0x77] %v113_v21 }
  0x93   :  { %v78_v23 = vpop.f32.mrf.mxu0  ;;  %v104_v24 = vpop.f32.mrf.mxu1 }
  0x94   :  { %v79_v25 = vadd.f32 %v78_v23, %v32_v22  ;;  %v105_v26 = vadd.f32 %v104_v24, %v32_v22 }
  0x96   :  { %116 = vst [vmem:[%s330_s4] sm:$0xff] %v79_v25 }
  0x97   :  { %117 = vst [vmem:[%s330_s4 + $0x8] sm:$0xff] %v105_v26 }
  0x98   :  { %v148_v27 = vpop.f32.mrf.mxu2  ;;  %v174_v28 = vpop.f32.mrf.mxu3 }
  0x99   :  { %v175_v29 = vadd.f32 %v174_v28, %v27_v15  ;;  %v149_v31 = vadd.f32 %v148_v27, %v27_v15 }
  0x9b   :  { %v185_v32 = vrot.slane %v175_v29, 4  ;;  %v81_v33 = vpop.f32.mrf.mxu0  ;;  %v107_v34 = vpop.f32.mrf.mxu1 }
  0x9c   :  { %v82_v35 = vadd.f32 %v81_v33, %v37_v30  ;;  %v108_v36 = vadd.f32 %v107_v34, %v37_v30 }
  0x9d   :  { %v186_v37 = vsel %vm53_vm0, %v149_v31, %v185_v32 }
  0x9e   :  { %220 = vst [vmem:[%s329_s3 + $0x8] sm:$0x77] %v186_v37 }
  0x9f   :  { %118 = vst [vmem:[%s330_s4 + $0x10] sm:$0xf] %v82_v35 }
  0xa0   :  { %v151_v38 = vpop.f32.mrf.mxu2  ;;  %v177_v39 = vpop.f32.mrf.mxu3  ;;  %119 = vst [vmem:[%s330_s4 + $0x18] sm:$0xf] %v108_v36 }
  0xa1   :  { %v152_v40 = vadd.f32 %v151_v38, %v32_v22  ;;  %v178_v41 = vadd.f32 %v177_v39, %v32_v22 }
  0xa3   :  { %221 = vst [vmem:[%s330_s4 + $0x20] sm:$0xff] %v152_v40 }
  0xa4   :  { %222 = vst [vmem:[%s330_s4 + $0x28] sm:$0xff] %v178_v41 }
  0xa8   :  { %v154_v42 = vpop.f32.mrf.mxu2  ;;  %v180_v43 = vpop.f32.mrf.mxu3 }
  0xa9   :  { %v155_v44 = vadd.f32 %v154_v42, %v37_v30  ;;  %v181_v45 = vadd.f32 %v180_v43, %v37_v30 }
  0xab   :  { %223 = vst [vmem:[%s330_s4 + $0x30] sm:$0xf] %v155_v44 }
  0xac   :  { %224 = vst [vmem:[%s330_s4 + $0x38] sm:$0xf] %v181_v45 }

</bundles_post_ra>
